<compile_context>
chip_gen: v5e
topology: v5e:2x2
jax: 0.10.0
libtpu: 0.0.40
codegen_flags: <defaults>
</compile_context>

<pallas_src>
from functools import partial

import jax
import jax.numpy as jnp
from jax import lax
from jax.experimental import pallas as pl
from jax.experimental.pallas import tpu as pltpu

EPS = 1e-5

# Safe on every generation: raises v5e's 16 MiB scoped default, equals v6e/v7x's
# 32 MiB scoped default, stays far below v7x's 64 MiB physical VMEM.
_VMEM_LIMIT = 32 * 1024 * 1024

# Elementwise activations that can be fused into the kernel epilogue.
_FUSED_ACTIVATIONS = {
    None: (lambda y: y),
    "identity": (lambda y: y),
    "gelu": jax.nn.gelu,
    "relu": jax.nn.relu,
    "silu": jax.nn.silu,
    "tanh": jnp.tanh,
}


# --------------------------------------------------------------------------- #
# Tile choosers
# --------------------------------------------------------------------------- #
def _choose_tiles(C, HW, itemsize, max_block_bytes):
    """Pick (T_C, T_HW) pass-2 block dims: lane-dense, packing-aware, <= cap."""
    sub = {4: 8, 2: 16, 1: 32}.get(itemsize, 8)          # sublane multiple per dtype
    if C % sub == 0:
        c_opts = [d for d in range(sub, C + 1, sub) if C % d == 0]
    else:
        c_opts = [C]                                      # full-dim exemption
    if HW % 128 == 0:
        hw_opts = [d for d in range(128, HW + 1, 128) if HW % d == 0]
    else:
        hw_opts = [HW]                                    # full-dim exemption
    for t_hw in sorted(hw_opts, reverse=True):            # lane-dense first
        for t_c in sorted(c_opts, reverse=True):
            if t_c * t_hw * itemsize <= max_block_bytes:
                return t_c, t_hw
    # TODO(synk): awkward non-divisible shapes can exceed the cap here; a masked
    # pl.cdiv grid would fix it, but such shapes are rare for conv feature maps.
    return c_opts[0], hw_opts[0]


def _choose_flat_tile(N, itemsize, cap_bytes):
    """Pick a pass-1 flat tile t_n (multiple of 1024) and padded length N_pad."""
    cap_elems = max(1024, (cap_bytes // itemsize) // 1024 * 1024)
    if N % 1024 == 0:
        best, d, limit = 0, 1024, min(N, cap_elems)
        while d <= limit:
            if N % d == 0:
                best = d
            d += 1024
        if best:
            return best, N                                # no padding needed
    t_n = min(cap_elems, ((N + 1023) // 1024) * 1024)
    n_pad = ((N + t_n - 1) // t_n) * t_n                  # zero-pad (sum/sumsq safe)
    return t_n, n_pad


# --------------------------------------------------------------------------- #
# Kernels
# --------------------------------------------------------------------------- #
def _fused_kernel(x_ref, w_ref, b_ref, o_ref, *, inv_n, act):
    """Single pass: stats + normalize + affine + activation on a resident sample."""
    xf = x_ref[...].astype(jnp.float32)                   # (1, C, HW)
    mean = jnp.sum(xf, keepdims=True) * inv_n             # (1, 1, 1)
    d = xf - mean
    var = jnp.sum(d * d, keepdims=True) * inv_n           # stable centered variance
    rstd = lax.rsqrt(var + EPS)
    scale = w_ref[...] * rstd                              # (1, C, 1)
    y = d * scale + b_ref[...]                             # per-channel affine
    o_ref[...] = act(y).astype(o_ref.dtype)                # fused epilogue (EUP slot)


def _stats_kernel(x_ref, mean_ref, rstd_ref, acc_ref, *, inv_n):
    """Pass 1: per-lane sum / sumsq accumulation over flat (rows, 128) tiles."""
    j = pl.program_id(1)

    @pl.when(j == 0)
    def _init():
        acc_ref[...] = jnp.zeros_like(acc_ref)

    # (1, t_r, 128) -> (t_r//8, 8, 128); summing over axis 0 is pure VPU vreg adds.
    xf = x_ref[...].astype(jnp.float32).reshape(-1, 8, 128)
    acc_ref[0] += jnp.sum(xf, axis=0)
    acc_ref[1] += jnp.sum(xf * xf, axis=0)

    @pl.when(j == pl.num_programs(1) - 1)
    def _finalize():
        s = jnp.sum(acc_ref[0], keepdims=True)             # (1, 1) — one XLU reduce
        ss = jnp.sum(acc_ref[1], keepdims=True)
        mean = s * inv_n
        var = jnp.maximum(ss * inv_n - mean * mean, 0.0)
        rstd = lax.rsqrt(var + EPS)
        mean_ref[0] = mean
        rstd_ref[0] = rstd


def _norm_affine_kernel(x_ref, scale_ref, shift_ref, o_ref, *, act):
    """Pass 2: y = x*scale + shift, then fused elementwise activation."""
    xf = x_ref[...].astype(jnp.float32)                    # (1, t_c, t_hw)
    y = xf * scale_ref[...] + shift_ref[...]               # (1, t_c, 1) broadcasts
    o_ref[...] = act(y).astype(o_ref.dtype)


# --------------------------------------------------------------------------- #
# Wrappers
# --------------------------------------------------------------------------- #
def groupnorm1_pallas(x_nchw, weight, bias, act=None, *,
                      max_fused_block_bytes=3 << 20,
                      pass1_block_bytes=4 << 20,
                      pass2_block_bytes=4 << 20):
    """GroupNorm(num_groups=1, C) on NCHW + optional fused elementwise activation."""
    B, C, H, W = x_nchw.shape
    HW = H * W
    N = C * HW
    itemsize = jnp.dtype(x_nchw.dtype).itemsize
    x = x_nchw.reshape(B, C, HW)
    w = weight.reshape(C, 1).astype(jnp.float32)
    b = bias.reshape(C, 1).astype(jnp.float32)
    act_fn = act if callable(act) else _FUSED_ACTIVATIONS[act]
    inv_n = 1.0 / float(N)

    # ---- Fused single-pass path: one HBM read + one write of x -------------
    if N * 4 <= max_fused_block_bytes:
        out = pl.pallas_call(
            partial(_fused_kernel, inv_n=inv_n, act=act_fn),
            out_shape=jax.ShapeDtypeStruct((B, C, HW), x.dtype),
            grid_spec=pltpu.PrefetchScalarGridSpec(
                num_scalar_prefetch=0,
                grid=(B,),
                in_specs=[
                    pl.BlockSpec((1, C, HW), lambda bi: (bi, 0, 0)),
                    pl.BlockSpec((C, 1), lambda bi: (0, 0)),   # resident, DMA'd once
                    pl.BlockSpec((C, 1), lambda bi: (0, 0)),
                ],
                out_specs=pl.BlockSpec((1, C, HW), lambda bi: (bi, 0, 0)),
            ),
            compiler_params=pltpu.CompilerParams(
                dimension_semantics=("parallel",),
                vmem_limit_bytes=_VMEM_LIMIT),
        )(x, w, b)
        return out.reshape(B, C, H, W)

    # ---- Two-pass tiled fallback --------------------------------------------
    # Pass 1: flat, contiguous, lane-dense reduction over (B, N//128, 128).
    t_n, n_pad = _choose_flat_tile(N, itemsize, pass1_block_bytes)
    x_flat = x.reshape(B, N)
    if n_pad != N:
        x_flat = jnp.pad(x_flat, ((0, 0), (0, n_pad - N)))  # zeros: sum/sumsq exact
    n_rows = n_pad // 128
    t_r = t_n // 128
    n_j = n_rows // t_r
    x_rows = x_flat.reshape(B, n_rows, 128)

    mean, rstd = pl.pallas_call(
        partial(_stats_kernel, inv_n=inv_n),
        out_shape=(jax.ShapeDtypeStruct((B, 1, 1), jnp.float32),
                   jax.ShapeDtypeStruct((B, 1, 1), jnp.float32)),
        grid_spec=pltpu.PrefetchScalarGridSpec(
            num_scalar_prefetch=0,
            grid=(B, n_j),
            in_specs=[
                pl.BlockSpec((1, t_r, 128), lambda bi, j: (bi, j, 0)),
            ],
            out_specs=[
                pl.BlockSpec((1, 1, 1), lambda bi, j: (bi, 0, 0)),
                pl.BlockSpec((1, 1, 1), lambda bi, j: (bi, 0, 0)),
            ],
            scratch_shapes=[pltpu.VMEM((2, 8, 128), jnp.float32)],
        ),
        compiler_params=pltpu.CompilerParams(
            dimension_semantics=("parallel", "arbitrary"),
            vmem_limit_bytes=_VMEM_LIMIT),
    )(x_rows)

    # Tiny JAX op between passes: fold mean/rstd/weight/bias into scale/shift.
    mean_b = mean.reshape(B, 1)
    rstd_b = rstd.reshape(B, 1)
    scale = rstd_b * weight.reshape(1, C).astype(jnp.float32)          # (B, C)
    shift = bias.reshape(1, C).astype(jnp.float32) - mean_b * scale    # (B, C)
    scale = scale.reshape(B, C, 1)
    shift = shift.reshape(B, C, 1)

    # Pass 2: normalize + affine + fused activation (fully parallel grid).
    t_c, t_hw = _choose_tiles(C, HW, itemsize, pass2_block_bytes)
    n_c, n_hw = C // t_c, HW // t_hw

    out = pl.pallas_call(
        partial(_norm_affine_kernel, act=act_fn),
        out_shape=jax.ShapeDtypeStruct((B, C, HW), x.dtype),
        grid_spec=pltpu.PrefetchScalarGridSpec(
            num_scalar_prefetch=0,
            grid=(B, n_c, n_hw),
            in_specs=[
                pl.BlockSpec((1, t_c, t_hw), lambda bi, ci, hi: (bi, ci, hi)),
                # Block index only depends on (bi, ci): re-DMA'd only when ci changes.
                pl.BlockSpec((1, t_c, 1), lambda bi, ci, hi: (bi, ci, 0)),
                pl.BlockSpec((1, t_c, 1), lambda bi, ci, hi: (bi, ci, 0)),
            ],
            out_specs=pl.BlockSpec((1, t_c, t_hw),
                                   lambda bi, ci, hi: (bi, ci, hi)),
        ),
        compiler_params=pltpu.CompilerParams(
            dimension_semantics=("parallel", "parallel", "parallel"),
            vmem_limit_bytes=_VMEM_LIMIT),
    )(x, scale, shift)

    return out.reshape(B, C, H, W)


def pre_norm_forward(x_nchw, weight, bias, fn=None, fused_activation=None, **kw):
    """PreNorm.forward: fn(GroupNorm(1, C)(x)).

    If the wrapped module is a simple elementwise activation, pass it via
    `fused_activation` (name or callable) so it runs in the kernel epilogue.
    """
    y = groupnorm1_pallas(x_nchw, weight, bias, act=fused_activation, **kw)
    if fn is not None:
        y = fn(y)  # non-elementwise wrapped modules applied as plain JAX glue
    return y


def _reference(x_nchw, weight, bias, fn):
    # Pure-JAX reference (two-pass mean/var, like PyTorch GroupNorm(1, C)).
    B, C, H, W = x_nchw.shape
    xf = x_nchw.astype(jnp.float32).reshape(B, -1)
    mean = xf.mean(axis=1, keepdims=True)
    var = ((xf - mean) ** 2).mean(axis=1, keepdims=True)
    y = ((xf - mean) * lax.rsqrt(var + EPS)).reshape(B, C, H, W)
    y = y * weight.reshape(1, C, 1, 1) + bias.reshape(1, C, 1, 1)
    return fn(y.astype(x_nchw.dtype))


if __name__ == "__main__":
    key = jax.random.PRNGKey(0)
    kx, kw, kb = jax.random.split(key, 3)

    # ---- 1) Fused single-pass path (default for small per-sample slabs) -----
    B, C, H, W = 2, 4, 16, 16
    x = jax.random.normal(kx, (B, C, H, W), dtype=jnp.float32)
    weight = 1.0 + 0.1 * jax.random.normal(kw, (C,), dtype=jnp.float32)
    bias = 0.1 * jax.random.normal(kb, (C,), dtype=jnp.float32)

    out = pre_norm_forward(x, weight, bias, fused_activation="gelu")
    out = jax.block_until_ready(out)
    ref = _reference(x, weight, bias, jax.nn.gelu)
    assert out.shape == (B, C, H, W)
    assert jnp.allclose(out, ref, atol=1e-4, rtol=1e-4), "fused path mismatch"

    # ---- 2) Two-pass tiled fallback (forced, with tiny caps so the multi-tile
    #         reduction and multi-tile normalize code paths are exercised) -----
    B2, C2, H2, W2 = 2, 16, 32, 32
    x2 = jax.random.normal(kx, (B2, C2, H2, W2), dtype=jnp.float32)
    w2 = 1.0 + 0.1 * jax.random.normal(kw, (C2,), dtype=jnp.float32)
    b2 = 0.1 * jax.random.normal(kb, (C2,), dtype=jnp.float32)

    out2 = groupnorm1_pallas(x2, w2, b2, act="gelu",
                             max_fused_block_bytes=0,   # force two-pass path
                             pass1_block_bytes=4096,    # -> 16 reduction steps
                             pass2_block_bytes=8192)    # -> (2, 2, 4) grid
    out2 = jax.block_until_ready(out2)
    ref2 = _reference(x2, w2, b2, jax.nn.gelu)
    assert jnp.allclose(out2, ref2, atol=1e-4, rtol=1e-4), "two-pass path mismatch"

    print("KERNEL_OK")
</pallas_src>

<mosaic_0001>
module attributes {stable_mosaic.version = 11 : i64} {
  func.func @_fused_kernel(%arg0: i32, %arg1: memref<1x4x256xf32, #tpu.memory_space<vmem>>, %arg2: memref<4x1xf32, #tpu.memory_space<vmem>>, %arg3: memref<4x1xf32, #tpu.memory_space<vmem>>, %arg4: memref<1x4x256xf32, #tpu.memory_space<vmem>>) attributes {dimension_semantics = [#tpu.dimension_semantics<parallel>], iteration_bounds = array<i64: 2>, scalar_prefetch = 0 : i64, scratch_operands = 0 : i64, tpu.core_type = #tpu.core_type<tc>, window_params = [{transform_indices = @transform_0, window_bounds = array<i64: 1, 4, 256>}, {pipeline_mode = #tpu.pipeline_mode<synchronous>, transform_indices = @transform_1, window_bounds = array<i64: 4, 1>}, {pipeline_mode = #tpu.pipeline_mode<synchronous>, transform_indices = @transform_2, window_bounds = array<i64: 4, 1>}, {transform_indices = @transform_3, window_bounds = array<i64: 1, 4, 256>}]} {
    %c0 = arith.constant 0 : index
    %c0_0 = arith.constant 0 : index
    %c0_1 = arith.constant 0 : index
    %0 = vector.load %arg1[%c0, %c0_0, %c0_1] : memref<1x4x256xf32, #tpu.memory_space<vmem>>, vector<1x4x256xf32>
    %1 = vector.shape_cast %0 : vector<1x4x256xf32> to vector<1x1x4x256xf32>
    %cst = arith.constant dense<0.000000e+00> : vector<1xf32>
    %2 = vector.multi_reduction <add>, %1, %cst [1, 2, 3] : vector<1x1x4x256xf32> to vector<1xf32>
    %3 = vector.shape_cast %2 : vector<1xf32> to vector<1x1x1x1xf32>
    %4 = vector.extract %3[0, 0, 0, 0] : f32 from vector<1x1x1x1xf32>
    %5 = vector.broadcast %4 : f32 to vector<1x1x1xf32>
    %cst_2 = arith.constant 9.765625E-4 : f32
    %6 = vector.broadcast %cst_2 : f32 to vector<1x1x1xf32>
    %7 = arith.mulf %5, %6 : vector<1x1x1xf32>
    %8 = vector.broadcast %7 : vector<1x1x1xf32> to vector<1x4x256xf32>
    %9 = arith.subf %0, %8 : vector<1x4x256xf32>
    %10 = arith.mulf %9, %9 : vector<1x4x256xf32>
    %11 = vector.shape_cast %10 : vector<1x4x256xf32> to vector<1x1x4x256xf32>
    %cst_3 = arith.constant dense<0.000000e+00> : vector<1xf32>
    %12 = vector.multi_reduction <add>, %11, %cst_3 [1, 2, 3] : vector<1x1x4x256xf32> to vector<1xf32>
    %13 = vector.shape_cast %12 : vector<1xf32> to vector<1x1x1x1xf32>
    %14 = vector.extract %13[0, 0, 0, 0] : f32 from vector<1x1x1x1xf32>
    %15 = vector.broadcast %14 : f32 to vector<1x1x1xf32>
    %cst_4 = arith.constant 9.765625E-4 : f32
    %16 = vector.broadcast %cst_4 : f32 to vector<1x1x1xf32>
    %17 = arith.mulf %15, %16 : vector<1x1x1xf32>
    %cst_5 = arith.constant 9.99999974E-6 : f32
    %18 = vector.broadcast %cst_5 : f32 to vector<1x1x1xf32>
    %19 = arith.addf %17, %18 : vector<1x1x1xf32>
    %20 = math.rsqrt %19 : vector<1x1x1xf32>
    %c0_6 = arith.constant 0 : index
    %c0_7 = arith.constant 0 : index
    %21 = vector.load %arg2[%c0_6, %c0_7] : memref<4x1xf32, #tpu.memory_space<vmem>>, vector<4x1xf32>
    %22 = vector.shape_cast %21 : vector<4x1xf32> to vector<1x4x1xf32>
    %23 = vector.broadcast %20 : vector<1x1x1xf32> to vector<1x4x1xf32>
    %24 = arith.mulf %22, %23 : vector<1x4x1xf32>
    %25 = vector.broadcast %24 : vector<1x4x1xf32> to vector<1x4x256xf32>
    %26 = arith.mulf %9, %25 : vector<1x4x256xf32>
    %c0_8 = arith.constant 0 : index
    %c0_9 = arith.constant 0 : index
    %27 = vector.load %arg3[%c0_8, %c0_9] : memref<4x1xf32, #tpu.memory_space<vmem>>, vector<4x1xf32>
    %28 = vector.shape_cast %27 : vector<4x1xf32> to vector<1x4x1xf32>
    %29 = vector.broadcast %28 : vector<1x4x1xf32> to vector<1x4x256xf32>
    %30 = arith.addf %26, %29 : vector<1x4x256xf32>
    %31 = arith.mulf %30, %30 : vector<1x4x256xf32>
    %32 = arith.mulf %30, %31 : vector<1x4x256xf32>
    %cst_10 = arith.constant 4.471500e-02 : f32
    %33 = vector.broadcast %cst_10 : f32 to vector<1x4x256xf32>
    %34 = arith.mulf %33, %32 : vector<1x4x256xf32>
    %35 = arith.addf %30, %34 : vector<1x4x256xf32>
    %cst_11 = arith.constant 0.797884583 : f32
    %36 = vector.broadcast %cst_11 : f32 to vector<1x4x256xf32>
    %37 = arith.mulf %36, %35 : vector<1x4x256xf32>
    %38 = math.tanh %37 : vector<1x4x256xf32>
    %cst_12 = arith.constant 1.000000e+00 : f32
    %39 = vector.broadcast %cst_12 : f32 to vector<1x4x256xf32>
    %40 = arith.addf %39, %38 : vector<1x4x256xf32>
    %cst_13 = arith.constant 5.000000e-01 : f32
    %41 = vector.broadcast %cst_13 : f32 to vector<1x4x256xf32>
    %42 = arith.mulf %41, %40 : vector<1x4x256xf32>
    %43 = arith.mulf %30, %42 : vector<1x4x256xf32>
    %c0_14 = arith.constant 0 : index
    %c0_15 = arith.constant 0 : index
    %c0_16 = arith.constant 0 : index
    %44 = vector.load %arg4[%c0_14, %c0_15, %c0_16] : memref<1x4x256xf32, #tpu.memory_space<vmem>>, vector<1x4x256xf32>
    tpu.vector_store %arg4[%c0_14, %c0_15, %c0_16], %43 {strides = array<i32>} : memref<1x4x256xf32, #tpu.memory_space<vmem>>, vector<1x4x256xf32>,
    return
  }
  func.func @transform_0(%arg0: i32) -> (i32, i32, i32) {
    %c0_i32 = arith.constant 0 : i32
    %c0_i32_0 = arith.constant 0 : i32
    %c0_i32_1 = arith.constant 0 : i32
    return %arg0, %c0_i32, %c0_i32_0 : i32, i32, i32
  }
  func.func @transform_1(%arg0: i32) -> (i32, i32) {
    %c0_i32 = arith.constant 0 : i32
    %c0_i32_0 = arith.constant 0 : i32
    %c0_i32_1 = arith.constant 0 : i32
    return %c0_i32, %c0_i32_0 : i32, i32
  }
  func.func @transform_2(%arg0: i32) -> (i32, i32) {
    %c0_i32 = arith.constant 0 : i32
    %c0_i32_0 = arith.constant 0 : i32
    %c0_i32_1 = arith.constant 0 : i32
    return %c0_i32, %c0_i32_0 : i32, i32
  }
  func.func @transform_3(%arg0: i32) -> (i32, i32, i32) {
    %c0_i32 = arith.constant 0 : i32
    %c0_i32_0 = arith.constant 0 : i32
    %c0_i32_1 = arith.constant 0 : i32
    return %arg0, %c0_i32, %c0_i32_0 : i32, i32, i32
  }
}

</mosaic_0001>

<bundles_post_ra>
// kernel: tpu_custom_call.1
= control target key start
LH: loop header
LB: loop body
LE: loop exit
PB: predicated region body
PF: predicated region fallthrough
CT: control target
= control target key end

     0   :  { %8 = vsyncpa [#allocation3], 0  ;;  %s699_s0 = inlined_call_operand.hbm [shape: f32[2,4,256], index: 0, kind: input, shape index: {}]   ;;  %s700_s1 = inlined_call_operand.vmem [shape: f32[4,1], index: 1, kind: input, shape index: {}]   ;;  %s701_s2 = inlined_call_operand.vmem [shape: f32[4,1], index: 2, kind: input, shape index: {}]   ;;  %s702_s3 = inlined_call_operand.hbm [shape: f32[2,4,256], index: 3, kind: output, shape index: {}]  }
   0x1   :  { %10 = vsyncpa [#allocation3 + $0x1], 0 }
   0x2   :  { %11 = vsyncpa [#allocation4], 0 }
   0x3   :  { %13 = vsyncpa [#allocation4 + $0x1], 0  ;;  %s558_s12 = smov 0   ;;  %s560_s13 = smov 0  }
   0x4   :  { %s562_s14 = smov 0   ;;  %s564_s15 = smov 0  }
   0x5 LB: > { %s579_s16 = sadd.s32 4294967295, %s534_s15   ;;  %s364_s17 = sadd.s32 4294967294, %s534_s15   ;;  %s534_s15 = sphi %s564_s15, %s712_s15   ;;  %s530_s14 = sphi %s562_s14, %s711_s14   ;;  %s526_s13 = sphi %s560_s13, %s710_s13   ;;  %s522_s12 = sphi %s558_s12, %s709_s12  }
   0x6   : > { %s583_s18 = sadd.s32 1, %s534_s15   ;;  %s26_s19 = sadd.s32 1, %s530_s14 }
   0x7   : > { %s23_s20 = ssub.s32 %s534_s15, %s583_s18  ;;  %p33_p0 = scmp.ne.s32.totalorder %s530_s14, %s526_s13 }
   0x8   : > { %p24_p1 = scmp.eq.s32.totalorder %s23_s20, 0  ;;  %p34_p2 = scmp.eq.s32.totalorder %s534_s15, 0 }
   0x9   : > { %p39_p3 = scmp.ne.s32.totalorder %s526_s13, %s522_s12  ;;  %p40_p4 = scmp.eq.s32.totalorder %s579_s16, 0 }
   0xa   : > { %s595_s21 = scalar_select %p24_p1, %s530_s14, %s26_s19  }
   0xb   : > { %p597_p5 = por %p34_p2, %p33_p0  ;;  %p601_p6 = por %p40_p4, %p39_p3 }
   0xc   : > { %p105_p7 = scmp.eq.s32.totalorder %s579_s16, 1  ;;  %p111_p8 = scmp.eq.s32.totalorder %s364_s17, 1 }
   0xd   : > { %p396_p10 = scmp.lt.s32.totalorder %s534_s15, 2  ;;  %s137_s26 = sand.u32 1, %s530_s14  }
   0xe   : > { %p608_p11 = por %p105_p7, %p33_p0  ;;  %p612_p12 = por %p111_p8, %p39_p3 }
   0xf   : > { %s378_s27 = sshll.u32 %s534_s15, 3  ;;  %s367_s28 = sshll.u32 %s137_s26, 3 }
  0x10   : > { %s146_s4 = scalar_lea.hbm %s699_s0, %s378_s27  ;;  %s141_s6 = scalar_lea.vmem [#allocation2], %s367_s28 }
  0x11   : > { %s148_s5 = sshll.u32 %s146_s4, 4  ;;  %s150_s7 = sshll.u32 %s141_s6, 4  ;;  %s149_s5 = int_to_ptr.hbm [resolvable:$true] %s148_s5  ;;  %s151_s7 = int_to_ptr.vmem [resolvable:$true] %s150_s7 }
  0x12   : > { %p623_p13 = pnand %p396_p10, %p597_p5  ;;  %p370_p0 = scmp.ge.s32.totalorder %s534_s15, 1 }
  0x13   : > { %p155_p1 = scmp.lt.s32.totalorder %s534_s15, 3  ;;  %s138_s9 = scalar_lea.sflag [#allocation3], %s137_s26 }
  0x14   : > { %s438_s10 = sshra.s32 %s149_s5, 4  ;;  %p442_p3 = pneg %p623_p13  ;;  %s439_s10 = int_to_ptr.hbm [resolvable:$true] %s438_s10 }
  0x15   : > { %s440_s11 = scalar_lea.hbm %s439_s10, 8  ;;  %s445_s20 = scalar_lea.hbm %s699_s0, 16 }
  0x16   : > { %p441_p2 = scmp.ne.s32.totalorder %s439_s10, %s440_s11  ;;  %p446_p5 = scmp.lt.s32.totalorder %s439_s10, %s699_s0 }
  0x17   : > { %p447_p8 = scmp.lt.s32.totalorder %s445_s20, %s440_s11 }
  0x18   : > { %p443_p4 = pnand %p442_p3, %p441_p2 }
  0x19   : > { %p448_p10 = por %p447_p8, %p446_p5 }
  0x1a   : > { %p444_p7 = pneg %p443_p4 }
  0x1c   : > { %p449_p9 = pnand %p448_p10, %p444_p7 }
  0x1e   : > { %452 = shalt.err (!%p449_p9)
}
  0x1f   : > { %391 = dma.hbm_to_vmem [thread:$0]  (!%p623_p13), %s149_s5, 128, %s151_s7, %s138_s9  }
  0x20   : > { %p156_p2 = pnand %p370_p0, %p155_p1 }
  0x21   : > { %s644_s26 = sand.u32 (!%p156_p2), 1, %s526_s13  }
  0x22   : > { %159 = sbr.rel (%p156_p2) target bundleno = 604 (0x25c), region = 32  ;;  %s371_s28 = sshll.u32 (!%p156_p2), %s644_s26, 3 }
  0x23   : > { %s162_s29 = scalar_lea.sflag (!%p156_p2), [#allocation3], %s644_s26  ;;  %s165_s30 = scalar_lea.vmem (!%p156_p2), [#allocation2], %s371_s28 }
  0x27   : > { %513 = dma.done.wait (%p601_p6), %s162_s29, 128  }
  0x28   : > { %515 = vsyncadd (%p601_p6), %s162_s29, 4294967168  ;;  %v189_v0 = vld [vmem:[%s165_s30] sm:$0xff]  ;;  %vm196_vm0 = vcmask 1043456   ;;  %v536_v29 = vmov 0   ;;  %v244_v39 = vld [vmem:[%s700_s1] sm:$0xf] }
  0x29   : > { %191 = vst [vmem:[#allocation1] ss:$2 sm:$0xff] %v189_v0  ;;  %432 = vset.pattern.permute.xlu1 %v536_v29  ;;  %433 = vset.pattern.permute.xlu0 %v536_v29  ;;  %v256_v42 = vld [vmem:[%s701_s2] sm:$0xf]  ;;  %v537_v43 = vmov 839922192  }
  0x2a   : > { %v251_v44 = vunpack.c.l.s4 %v537_v43  ;;  %s379_s9 = sshll.u32 %s579_s16, 3  ;;  %s188_s19 = scalar_lea.vmem [#allocation5], %s371_s28 }
  0x2b   : > { %s289_s17 = scalar_lea.hbm %s702_s3, %s379_s9  ;;  %s291_s20 = sshll.u32 %s188_s19, 4  ;;  %s292_s20 = int_to_ptr.vmem [resolvable:$true] %s291_s20 }
  0x2c   : > { %v252_v46 = vunpack.c.0.s8 %v251_v44  ;;  %s293_s22 = sshll.u32 %s289_s17, 4  ;;  %s278_s27 = scalar_lea.sflag [#allocation4], %s644_s26  ;;  %s294_s22 = int_to_ptr.hbm [resolvable:$true] %s293_s22 }
  0x2d   : > { %s482_s29 = sshra.s32 %s294_s22, 4  ;;  %s483_s29 = int_to_ptr.hbm [resolvable:$true] %s482_s29 }
  0x2e   : > { %s484_s16 = scalar_lea.hbm %s483_s29, 8  ;;  %p489_p0 = scmp.lt.s32.totalorder %s483_s29, %s702_s3 }
  0x2f   : > { %p485_p6 = scmp.ne.s32.totalorder %s483_s29, %s484_s16 }
  0x30   : > { %v192_v1 = vld.sshfl [vmem:[#allocation1] sm:$0xff pattern:$0x75316420]  ;;  %v193_v2 = vld.sshfl [vmem:[#allocation1 + $0x8] sm:$0xff pattern:$0x75316420] }
  0x31   : > { %v197_v3 = vsel %vm196_vm0, %v192_v1, 0.0  ;;  %v198_v4 = vsel %vm196_vm0, %v193_v2, 0.0  ;;  %p486_p9 = pnand %p485_p6, %p608_p11 }
  0x32   : > { %v199_v5 = vadd.f32 %v198_v4, %v197_v3 }
  0x33   : > { %p487_p13 = pneg %p486_p9 }
  0x34   : > { %200 = vadd.xlane.f32.xlu0 %v199_v5 }
  0xa7   : > { %v201_v6 = vpop.xlane.xlu0 %200 }
  0xa8   : > { %v202_v7 = vrot.slane %v201_v6, 4 }
  0xaa   : > { %v203_v8 = vadd.f32 %v202_v7, %v201_v6 }
  0xac   : > { %v204_v9 = vrot.slane %v203_v8, 2 }
  0xae   : > { %v205_v10 = vadd.f32 %v204_v9, %v203_v8 }
  0xb0   : > { %v206_v11 = vrot.slane %v205_v10, 1 }
  0xb2   : > { %v207_v12 = vadd.f32 %v206_v11, %v205_v10 }
  0xb4   : > { %380 = vpush %v207_v12 }
  0xe5   : > { %s381_s23 = spop %380 }
  0xe6   : > { %v209_v13 = vstv %s381_s23 }
  0xe7   : > { %v210_v14 = vmul.f32 0.0009765625, %v209_v13 }
  0xe9   : > { %v211_v15 = vsub.f32 %v189_v0, %v210_v14 }
  0xeb   : > { %v212_v16 = vmul.f32 %v211_v15, %v211_v15 }
  0xed   : > { %214 = vst [vmem:[#allocation1] ss:$2 sm:$0xff] %v212_v16 }
  0xf4   : > { %v215_v17 = vld.sshfl [vmem:[#allocation1] sm:$0xff pattern:$0x75316420]  ;;  %v216_v18 = vld.sshfl [vmem:[#allocation1 + $0x8] sm:$0xff pattern:$0x75316420] }
  0xf5   : > { %v219_v19 = vsel %vm196_vm0, %v215_v17, 0.0  ;;  %v220_v20 = vsel %vm196_vm0, %v216_v18, 0.0 }
  0xf6   : > { %v221_v21 = vadd.f32 %v220_v20, %v219_v19 }
  0xf8   : > { %222 = vadd.xlane.f32.xlu0 %v221_v21 }
 0x16b   : > { %v223_v22 = vpop.xlane.xlu0 %222 }
 0x16c   : > { %v224_v23 = vrot.slane %v223_v22, 4 }
 0x16e   : > { %v225_v24 = vadd.f32 %v224_v23, %v223_v22 }
 0x170   : > { %v226_v25 = vrot.slane %v225_v24, 2 }
 0x172   : > { %v227_v26 = vadd.f32 %v226_v25, %v225_v24 }
 0x174   : > { %v228_v27 = vrot.slane %v227_v26, 1 }
 0x176   : > { %v229_v28 = vadd.f32 %v228_v27, %v227_v26 }
 0x178   : > { %382 = vpush %v229_v28 }
 0x1a9   : > { %s383_s4 = spop %382 }
 0x1aa   : > { %v231_v30 = vstv %s383_s4  ;;  %s488_s4 = scalar_lea.hbm %s702_s3, 16 }
 0x1ab   : > { %v232_v31 = vmul.f32 0.0009765625, %v231_v30  ;;  %p490_p1 = scmp.lt.s32.totalorder %s488_s4, %s484_s16 }
 0x1ad   : > { %v233_v32 = vadd.f32 1e-05, %v232_v31  ;;  %p491_p3 = por %p490_p1, %p489_p0 }
 0x1af   : > { %434 = vrsqrt.f32 %v233_v32  ;;  %vm240_vm2 = vweird.f32 %v233_v32  ;;  %p492_p4 = pnand %p491_p3, %p487_p13 }
 0x1b5   : > { %v435_v33 = vpop.eup %434 }
 0x1b6   : > { %v235_v34 = vmul.f32 %v435_v33, %v233_v32  ;;  %vm241_vm1 = vweird.f32 %v435_v33 }
 0x1b7   : > { %vm242_vm3 = vmor %vm240_vm2, %vm241_vm1 }
 0x1b8   : > { %v236_v35 = vmul.f32 %v435_v33, %v235_v34 }
 0x1ba   : > { %v237_v36 = vmul.f32 0.5, %v236_v35 }
 0x1bc   : > { %v238_v37 = vsub.f32 1.5, %v237_v36 }
 0x1be   : > { %v239_v38 = vmul.f32 %v435_v33, %v238_v37 }
 0x1c0   : > { %v243_v40 = vsel %vm242_vm3, %v435_v33, %v239_v38 }
 0x1c1   : > { %v245_v41 = vmul.f32 %v244_v39, %v243_v40 }
 0x1c3   : > { %248 = vperm.xlu1 %432, %v245_v41  }
 0x1cb   : > { %259 = vperm.xlu1 %432, %v256_v42  }
 0x235   : > { %v249_v45 = vpop.permute.xlu1 %248 }
 0x236   : > { %v253_v47 = vperm.slane %v249_v45, %v252_v46 }
 0x238   : > { %v255_v49 = vmul.f32 %v253_v47, %v211_v15 }
 0x23d   : > { %v260_v48 = vpop.permute.xlu1 %259 }
 0x23e   : > { %v264_v50 = vperm.slane %v260_v48, %v252_v46 }
 0x240   : > { %v266_v51 = vadd.f32 %v264_v50, %v255_v49 }
 0x242   : > { %v267_v52 = vmul.f32 %v266_v51, %v266_v51 }
 0x244   : > { %v268_v53 = vmul.f32 %v267_v52, %v266_v51 }
 0x246   : > { %v269_v54 = vmul.f32 0.044715, %v268_v53 }
 0x248   : > { %v270_v55 = vadd.f32 %v269_v54, %v266_v51 }
 0x24a   : > { %v271_v56 = vmul.f32 0.7978846, %v270_v55 }
 0x24c   : > { %436 = vtanh.f32 %v271_v56 }
 0x252   : > { %v437_v57 = vpop.eup %436 }
 0x253   : > { %v273_v58 = vadd.f32 1.0, %v437_v57 }
 0x255   : > { %v274_v59 = vmul.f32 0.5, %v273_v58 }
 0x257   : > { %v275_v60 = vmul.f32 %v274_v59, %v266_v51 }
 0x259   : > { %276 = vst [vmem:[%s188_s19] sm:$0xff] %v275_v60 }
 0x25a   : > { %495 = shalt.err (!%p492_p4)
}
 0x25b   : > { %386 = dma.vmem_to_hbm [thread:$0]  (%p608_p11), %s292_s20, 128, %s294_s22, %s278_s27  }
 0x25c PF: > { %s305_s26 = sand.u32 1, %s522_s12   ;;  %p708_p7 = scmp.ge.s32.totalorder %s534_s15, 2 }
 0x25d   : > { %s306_s6 = scalar_lea.sflag [#allocation4], %s305_s26 }
 0x25e   : > { %p393_p5 = pnand %p708_p7, %p612_p12 }
 0x260   : > { %p394_p8 = pneg %p393_p5 }
 0x262   : > { %517 = dma.done.wait (%p394_p8), %s306_s6, 128  }
 0x263   : > { %519 = vsyncadd (%p394_p8), %s306_s6, 4294967168  ;;  %p16_p10 = scmp.ge.s32.totalorder %s583_s18, 4   ;;  %s709_s12 = smov %s526_s13 }
 0x264   : > { %s710_s13 = smov %s530_s14  ;;  %s711_s14 = smov %s595_s21 }
 0x265   : > { %s712_s15 = smov %s583_s18  ;;  %18 = sbr.rel (!%p16_p10) target bundleno = 5 (0x5), region = 77 }
 0x26a   :  { %312 = vsyncpa [#allocation3], 1 }
 0x26b   :  { %314 = vsyncpa [#allocation3 + $0x1], 1 }
 0x26c   :  { %315 = vsyncpa [#allocation4], 1 }
 0x26d   :  { %317 = vsyncpa [#allocation4 + $0x1], 1 }

</bundles_post_ra>
